<compile_context>
chip_gen: v5e
topology: v5e:2x2
jax: 0.10.0
libtpu: 0.0.40
codegen_flags: <defaults>
</compile_context>

<pallas_src>
import math

import jax
import jax.numpy as jnp
from jax.experimental import pallas as pl
from jax.experimental.pallas import tpu as pltpu

LANE = 128        # hidden feature dims padded to multiples of this
SUBLANE = 8       # batch tile must be a multiple of this
SPLIT_MIN = 512   # if the (rounded) batch is >= this and fits one tile, split in 2


def _round_up(x, m):
    return ((x + m - 1) // m) * m


# ------------------------------- kernel body ---------------------------------

def _policy_kernel(state_ref, w1_ref, b1_ref, w2_ref, b2_ref, wm_ref, bm_ref,
                   scale_ref, bias_ref, out_ref):
    # state_ref: [tb, num_inputs] f32   w*: bf16   b*/scale/bias: f32
    # out_ref:   [tb, num_actions] f32
    x = state_ref[...].astype(jnp.bfloat16)              # cast in-kernel (VPU)

    # linear1 + relu  (bf16 MXU operands, f32 accumulate & epilogue)
    h1 = jnp.dot(x, w1_ref[...], preferred_element_type=jnp.float32) + b1_ref[...]
    h1 = jnp.maximum(h1, 0.0)

    # linear2 + relu
    h2 = jnp.dot(h1.astype(jnp.bfloat16), w2_ref[...],
                 preferred_element_type=jnp.float32) + b2_ref[...]
    h2 = jnp.maximum(h2, 0.0)

    # mean head + tanh (EUP), then per-action-dim affine
    m = jnp.dot(h2.astype(jnp.bfloat16), wm_ref[...],
                preferred_element_type=jnp.float32) + bm_ref[...]
    m = jnp.tanh(m)
    out_ref[...] = (m * scale_ref[...] + bias_ref[...]).astype(out_ref.dtype)


# --------------------------------- wrapper ------------------------------------

def deterministic_policy_forward(state, params,
                                 action_scale=1.0, action_bias=0.0,
                                 max_batch_tile=1024,
                                 xla_fallback_max_batch=0):
    """Pallas wrapper.

    state:  [B, num_inputs] f32 (unpadded).
    params: padded/bf16 params from pad_params_for_kernel().
    Returns [B, num_actions] f32.
    """
    B, num_inputs = state.shape
    in_dim, hid_pad = params["w1"].shape
    num_actions = params["wm"].shape[1]
    assert num_inputs == in_dim, "state feature dim must match w1"

    # scale / bias as (1, num_actions) f32 (handles scalars and per-dim arrays).
    scale = jnp.broadcast_to(
        jnp.asarray(action_scale, jnp.float32).reshape(1, -1), (1, num_actions))
    bias = jnp.broadcast_to(
        jnp.asarray(action_bias, jnp.float32).reshape(1, -1), (1, num_actions))

    # Tiny acting-path batches: pallas_call launch + step overhead dominates;
    # optional pure-XLA fallback (disabled by default).
    if B <= xla_fallback_max_batch:
        h1 = jax.nn.relu(state.astype(jnp.bfloat16) @ params["w1"]
                         + params["b1"]).astype(jnp.bfloat16)
        h2 = jax.nn.relu(h1 @ params["w2"] + params["b2"]).astype(jnp.bfloat16)
        m = jnp.tanh(h2 @ params["wm"] + params["bm"])
        return (m * scale + bias).astype(jnp.float32)

    # Batch tile: multiple of 8, capped; guarantee >=2 grid steps for large
    # batches so both v7x TensorCores participate.
    b8 = _round_up(max(B, 1), SUBLANE)
    tb = min(max_batch_tile, b8)
    if tb == b8 and b8 >= SPLIT_MIN:
        tb = _round_up((b8 + 1) // 2, SUBLANE)
    b_pad = _round_up(B, tb)

    # Only wrapper copy left: batch padding, and only when needed.
    state_in = state if b_pad == B else jnp.pad(state, ((0, b_pad - B), (0, 0)))

    grid = (b_pad // tb,)

    def const_spec(shape):
        # Same block every grid step -> stays VMEM-resident.
        return pl.BlockSpec(shape, lambda i: (0, 0))

    # VMEM hint: resident weights + double-buffered state/out + f32 intermediates.
    w_bytes = 2 * (in_dim * hid_pad + hid_pad * hid_pad + hid_pad * num_actions)
    io_bytes = 2 * (tb * in_dim * 4 + tb * num_actions * 4)
    inter_bytes = 2 * tb * hid_pad * 4
    est = 2 * w_bytes + io_bytes + inter_bytes + (1 << 20)
    vmem_limit = int(min(64 << 20, max(16 << 20, 2 * est)))

    cost = pl.CostEstimate(
        flops=2 * b_pad * (in_dim * hid_pad + hid_pad * hid_pad
                           + hid_pad * num_actions),
        transcendentals=b_pad * num_actions,
        bytes_accessed=(b_pad * in_dim * 4 + b_pad * num_actions * 4 + w_bytes),
    )

    # TODO(synk): for very large tb, an inner lax.fori_loop over 256-row
    # sub-tiles would bound f32 intermediate live ranges (helps v5e spills).
    out = pl.pallas_call(
        _policy_kernel,
        out_shape=jax.ShapeDtypeStruct((b_pad, num_actions), jnp.float32),
        grid=grid,
        in_specs=[
            pl.BlockSpec((tb, in_dim), lambda i: (i, 0)),   # state: tiled over batch
            const_spec((in_dim, hid_pad)),                  # w1
            const_spec((1, hid_pad)),                       # b1
            const_spec((hid_pad, hid_pad)),                 # w2
            const_spec((1, hid_pad)),                       # b2
            const_spec((hid_pad, num_actions)),             # wm (narrow N, full extent)
            const_spec((1, num_actions)),                   # bm
            const_spec((1, num_actions)),                   # action_scale
            const_spec((1, num_actions)),                   # action_bias
        ],
        out_specs=pl.BlockSpec((tb, num_actions), lambda i: (i, 0)),
        compiler_params=pltpu.CompilerParams(
            dimension_semantics=("parallel",),
            vmem_limit_bytes=vmem_limit),
        cost_estimate=cost,
    )(
        state_in,
        params["w1"], params["b1"],
        params["w2"], params["b2"],
        params["wm"], params["bm"],
        scale, bias,
    )
    return out if b_pad == B else out[:B]


# ----------------------------- init / reference ------------------------------

def xavier_uniform(key, fan_in, fan_out, gain=1.0):
    """Matches torch.nn.init.xavier_uniform_; returns [fan_in, fan_out] (pre-transposed)."""
    bound = gain * math.sqrt(6.0 / (fan_in + fan_out))
    return jax.random.uniform(
        key, (fan_in, fan_out), dtype=jnp.float32, minval=-bound, maxval=bound)


def init_params(key, num_inputs, num_actions, hidden_dim):
    """Unpadded f32 master params (weights stored as [in, out]); mirrors weights_init_."""
    k1, k2, k3 = jax.random.split(key, 3)
    return {
        "w1": xavier_uniform(k1, num_inputs, hidden_dim),
        "b1": jnp.zeros((1, hidden_dim), dtype=jnp.float32),
        "w2": xavier_uniform(k2, hidden_dim, hidden_dim),
        "b2": jnp.zeros((1, hidden_dim), dtype=jnp.float32),
        "wm": xavier_uniform(k3, hidden_dim, num_actions),
        "bm": jnp.zeros((1, num_actions), dtype=jnp.float32),
    }


def pad_params_for_kernel(params):
    """One-time derivation of the bf16 inference copy (keep f32 `params` as master).

    Only the hidden dims are padded to multiples of 128 (lane-dense MXU
    operands); the state feature dim (K of w1) and num_actions (N of wm) stay
    at their true sizes.  Zero padding is exact: padded rows/cols contribute
    nothing to the matmuls (biases for padded hidden cols are zero)."""

    def pad_cols(w, dtype):
        r, c = w.shape
        cp = _round_up(c, LANE)
        out = jnp.zeros((r, cp), dtype=dtype)
        return out.at[:, :c].set(w.astype(dtype))

    def pad_both(w):
        r, c = w.shape
        rp, cp = _round_up(r, LANE), _round_up(c, LANE)
        out = jnp.zeros((rp, cp), dtype=jnp.bfloat16)
        return out.at[:r, :c].set(w.astype(jnp.bfloat16))

    def pad_rows(w):
        r, c = w.shape
        rp = _round_up(r, LANE)
        out = jnp.zeros((rp, c), dtype=jnp.bfloat16)
        return out.at[:r, :].set(w.astype(jnp.bfloat16))

    return {
        "w1": pad_cols(params["w1"], jnp.bfloat16),   # [num_inputs, hid_pad]
        "b1": pad_cols(params["b1"], jnp.float32),    # [1, hid_pad]
        "w2": pad_both(params["w2"]),                 # [hid_pad, hid_pad]
        "b2": pad_cols(params["b2"], jnp.float32),    # [1, hid_pad]
        "wm": pad_rows(params["wm"]),                 # [hid_pad, num_actions]
        "bm": params["bm"].astype(jnp.float32),       # [1, num_actions]
    }


def reference_forward(state, params, action_scale=1.0, action_bias=0.0):
    """Pure-JAX f32 reference for correctness check."""
    h1 = jax.nn.relu(state @ params["w1"] + params["b1"])
    h2 = jax.nn.relu(h1 @ params["w2"] + params["b2"])
    mean = jnp.tanh(h2 @ params["wm"] + params["bm"])
    return mean * jnp.asarray(action_scale, jnp.float32) + jnp.asarray(action_bias, jnp.float32)


if __name__ == "__main__":
    # Small shapes consistent with the module.
    num_inputs, num_actions, hidden_dim = 16, 4, 32

    key = jax.random.PRNGKey(0)
    k_s1, k_s2, k_params = jax.random.split(key, 3)

    params = init_params(k_params, num_inputs, num_actions, hidden_dim)
    padded_params = pad_params_for_kernel(params)

    # --- test 1: action_space=None (scale=1, bias=0), B=8, single grid step ---
    state1 = jax.random.normal(k_s1, (8, num_inputs), dtype=jnp.float32)
    out1 = deterministic_policy_forward(state1, padded_params)
    out1 = jax.block_until_ready(out1)
    ref1 = reference_forward(state1, params)
    assert out1.shape == (8, num_actions)
    assert jnp.allclose(out1, ref1, atol=2e-2, rtol=2e-2), "mismatch (test 1)"

    # --- test 2: per-action-dim scale/bias, B=37 (batch padding + multi-tile grid) ---
    action_scale = jnp.array([1.5, 2.0, 0.5, 1.0], dtype=jnp.float32)
    action_bias = jnp.array([0.1, -0.2, 0.0, 0.3], dtype=jnp.float32)
    state2 = jax.random.normal(k_s2, (37, num_inputs), dtype=jnp.float32)
    out2 = deterministic_policy_forward(
        state2, padded_params,
        action_scale=action_scale, action_bias=action_bias,
        max_batch_tile=16)
    out2 = jax.block_until_ready(out2)
    ref2 = reference_forward(state2, params, action_scale, action_bias)
    assert out2.shape == (37, num_actions)
    assert jnp.allclose(out2, ref2, atol=4e-2, rtol=2e-2), "mismatch (test 2)"

    # TODO(synk): sample() uses stateful torch Normal noise; only forward() is kernelized.
    print("KERNEL_OK")
</pallas_src>

<mosaic_0001>
module attributes {stable_mosaic.version = 11 : i64} {
  func.func @_policy_kernel(%arg0: i32, %arg1: memref<8x16xf32, #tpu.memory_space<vmem>>, %arg2: memref<16x128xbf16, #tpu.memory_space<vmem>>, %arg3: memref<1x128xf32, #tpu.memory_space<vmem>>, %arg4: memref<128x128xbf16, #tpu.memory_space<vmem>>, %arg5: memref<1x128xf32, #tpu.memory_space<vmem>>, %arg6: memref<128x4xbf16, #tpu.memory_space<vmem>>, %arg7: memref<1x4xf32, #tpu.memory_space<vmem>>, %arg8: memref<1x4xf32, #tpu.memory_space<vmem>>, %arg9: memref<1x4xf32, #tpu.memory_space<vmem>>, %arg10: memref<8x4xf32, #tpu.memory_space<vmem>>) attributes {dimension_semantics = [#tpu.dimension_semantics<parallel>], iteration_bounds = array<i64: 1>, scalar_prefetch = 0 : i64, scratch_operands = 0 : i64, tpu.core_type = #tpu.core_type<tc>, window_params = [{transform_indices = @transform_0, window_bounds = array<i64: 8, 16>}, {pipeline_mode = #tpu.pipeline_mode<synchronous>, transform_indices = @transform_1, window_bounds = array<i64: 16, 128>}, {pipeline_mode = #tpu.pipeline_mode<synchronous>, transform_indices = @transform_2, window_bounds = array<i64: 1, 128>}, {pipeline_mode = #tpu.pipeline_mode<synchronous>, transform_indices = @transform_3, window_bounds = array<i64: 128, 128>}, {pipeline_mode = #tpu.pipeline_mode<synchronous>, transform_indices = @transform_4, window_bounds = array<i64: 1, 128>}, {pipeline_mode = #tpu.pipeline_mode<synchronous>, transform_indices = @transform_5, window_bounds = array<i64: 128, 4>}, {pipeline_mode = #tpu.pipeline_mode<synchronous>, transform_indices = @transform_6, window_bounds = array<i64: 1, 4>}, {pipeline_mode = #tpu.pipeline_mode<synchronous>, transform_indices = @transform_7, window_bounds = array<i64: 1, 4>}, {pipeline_mode = #tpu.pipeline_mode<synchronous>, transform_indices = @transform_8, window_bounds = array<i64: 1, 4>}, {transform_indices = @transform_9, window_bounds = array<i64: 8, 4>}]} {
    %c0 = arith.constant 0 : index
    %c0_0 = arith.constant 0 : index
    %0 = vector.load %arg1[%c0, %c0_0] : memref<8x16xf32, #tpu.memory_space<vmem>>, vector<8x16xf32>
    %1 = arith.truncf %0 : vector<8x16xf32> to vector<8x16xbf16>
    %c0_1 = arith.constant 0 : index
    %c0_2 = arith.constant 0 : index
    %2 = vector.load %arg2[%c0_1, %c0_2] : memref<16x128xbf16, #tpu.memory_space<vmem>>, vector<16x128xbf16>
    %cst = arith.constant dense<0.000000e+00> : vector<8x128xf32>
    %3 = tpu.matmul %1, %2, %cst {dimension_numbers = #tpu.dot_dimension_numbers<[1], [0], [0], [1], [0, 0, 1, 1], [], []>} : vector<8x16xbf16>, vector<16x128xbf16>, vector<8x128xf32> -> vector<8x128xf32>
    %c0_3 = arith.constant 0 : index
    %c0_4 = arith.constant 0 : index
    %4 = vector.load %arg3[%c0_3, %c0_4] : memref<1x128xf32, #tpu.memory_space<vmem>>, vector<1x128xf32>
    %5 = vector.broadcast %4 : vector<1x128xf32> to vector<8x128xf32>
    %6 = arith.addf %3, %5 : vector<8x128xf32>
    %cst_5 = arith.constant 0.000000e+00 : f32
    %7 = vector.broadcast %cst_5 : f32 to vector<8x128xf32>
    %8 = arith.maximumf %6, %7 : vector<8x128xf32>
    %9 = arith.truncf %8 : vector<8x128xf32> to vector<8x128xbf16>
    %c0_6 = arith.constant 0 : index
    %c0_7 = arith.constant 0 : index
    %10 = vector.load %arg4[%c0_6, %c0_7] : memref<128x128xbf16, #tpu.memory_space<vmem>>, vector<128x128xbf16>
    %cst_8 = arith.constant dense<0.000000e+00> : vector<8x128xf32>
    %11 = tpu.matmul %9, %10, %cst_8 {dimension_numbers = #tpu.dot_dimension_numbers<[1], [0], [0], [1], [0, 0, 1, 1], [], []>} : vector<8x128xbf16>, vector<128x128xbf16>, vector<8x128xf32> -> vector<8x128xf32>
    %c0_9 = arith.constant 0 : index
    %c0_10 = arith.constant 0 : index
    %12 = vector.load %arg5[%c0_9, %c0_10] : memref<1x128xf32, #tpu.memory_space<vmem>>, vector<1x128xf32>
    %13 = vector.broadcast %12 : vector<1x128xf32> to vector<8x128xf32>
    %14 = arith.addf %11, %13 : vector<8x128xf32>
    %cst_11 = arith.constant 0.000000e+00 : f32
    %15 = vector.broadcast %cst_11 : f32 to vector<8x128xf32>
    %16 = arith.maximumf %14, %15 : vector<8x128xf32>
    %17 = arith.truncf %16 : vector<8x128xf32> to vector<8x128xbf16>
    %c0_12 = arith.constant 0 : index
    %c0_13 = arith.constant 0 : index
    %18 = vector.load %arg6[%c0_12, %c0_13] : memref<128x4xbf16, #tpu.memory_space<vmem>>, vector<128x4xbf16>
    %cst_14 = arith.constant dense<0.000000e+00> : vector<8x4xf32>
    %19 = tpu.matmul %17, %18, %cst_14 {dimension_numbers = #tpu.dot_dimension_numbers<[1], [0], [0], [1], [0, 0, 1, 1], [], []>} : vector<8x128xbf16>, vector<128x4xbf16>, vector<8x4xf32> -> vector<8x4xf32>
    %c0_15 = arith.constant 0 : index
    %c0_16 = arith.constant 0 : index
    %20 = vector.load %arg7[%c0_15, %c0_16] : memref<1x4xf32, #tpu.memory_space<vmem>>, vector<1x4xf32>
    %21 = vector.broadcast %20 : vector<1x4xf32> to vector<8x4xf32>
    %22 = arith.addf %19, %21 : vector<8x4xf32>
    %23 = math.tanh %22 : vector<8x4xf32>
    %c0_17 = arith.constant 0 : index
    %c0_18 = arith.constant 0 : index
    %24 = vector.load %arg8[%c0_17, %c0_18] : memref<1x4xf32, #tpu.memory_space<vmem>>, vector<1x4xf32>
    %25 = vector.broadcast %24 : vector<1x4xf32> to vector<8x4xf32>
    %26 = arith.mulf %23, %25 : vector<8x4xf32>
    %c0_19 = arith.constant 0 : index
    %c0_20 = arith.constant 0 : index
    %27 = vector.load %arg9[%c0_19, %c0_20] : memref<1x4xf32, #tpu.memory_space<vmem>>, vector<1x4xf32>
    %28 = vector.broadcast %27 : vector<1x4xf32> to vector<8x4xf32>
    %29 = arith.addf %26, %28 : vector<8x4xf32>
    %c0_21 = arith.constant 0 : index
    %c0_22 = arith.constant 0 : index
    %30 = vector.load %arg10[%c0_21, %c0_22] : memref<8x4xf32, #tpu.memory_space<vmem>>, vector<8x4xf32>
    tpu.vector_store %arg10[%c0_21, %c0_22], %29 {strides = array<i32>} : memref<8x4xf32, #tpu.memory_space<vmem>>, vector<8x4xf32>,
    return
  }
  func.func @transform_0(%arg0: i32) -> (i32, i32) {
    %c0_i32 = arith.constant 0 : i32
    %c0_i32_0 = arith.constant 0 : i32
    return %arg0, %c0_i32 : i32, i32
  }
  func.func @transform_1(%arg0: i32) -> (i32, i32) {
    %c0_i32 = arith.constant 0 : i32
    %c0_i32_0 = arith.constant 0 : i32
    %c0_i32_1 = arith.constant 0 : i32
    return %c0_i32, %c0_i32_0 : i32, i32
  }
  func.func @transform_2(%arg0: i32) -> (i32, i32) {
    %c0_i32 = arith.constant 0 : i32
    %c0_i32_0 = arith.constant 0 : i32
    %c0_i32_1 = arith.constant 0 : i32
    return %c0_i32, %c0_i32_0 : i32, i32
  }
  func.func @transform_3(%arg0: i32) -> (i32, i32) {
    %c0_i32 = arith.constant 0 : i32
    %c0_i32_0 = arith.constant 0 : i32
    %c0_i32_1 = arith.constant 0 : i32
    return %c0_i32, %c0_i32_0 : i32, i32
  }
  func.func @transform_4(%arg0: i32) -> (i32, i32) {
    %c0_i32 = arith.constant 0 : i32
    %c0_i32_0 = arith.constant 0 : i32
    %c0_i32_1 = arith.constant 0 : i32
    return %c0_i32, %c0_i32_0 : i32, i32
  }
  func.func @transform_5(%arg0: i32) -> (i32, i32) {
    %c0_i32 = arith.constant 0 : i32
    %c0_i32_0 = arith.constant 0 : i32
    %c0_i32_1 = arith.constant 0 : i32
    return %c0_i32, %c0_i32_0 : i32, i32
  }
  func.func @transform_6(%arg0: i32) -> (i32, i32) {
    %c0_i32 = arith.constant 0 : i32
    %c0_i32_0 = arith.constant 0 : i32
    %c0_i32_1 = arith.constant 0 : i32
    return %c0_i32, %c0_i32_0 : i32, i32
  }
  func.func @transform_7(%arg0: i32) -> (i32, i32) {
    %c0_i32 = arith.constant 0 : i32
    %c0_i32_0 = arith.constant 0 : i32
    %c0_i32_1 = arith.constant 0 : i32
    return %c0_i32, %c0_i32_0 : i32, i32
  }
  func.func @transform_8(%arg0: i32) -> (i32, i32) {
    %c0_i32 = arith.constant 0 : i32
    %c0_i32_0 = arith.constant 0 : i32
    %c0_i32_1 = arith.constant 0 : i32
    return %c0_i32, %c0_i32_0 : i32, i32
  }
  func.func @transform_9(%arg0: i32) -> (i32, i32) {
    %c0_i32 = arith.constant 0 : i32
    %c0_i32_0 = arith.constant 0 : i32
    return %arg0, %c0_i32 : i32, i32
  }
}

</mosaic_0001>

<bundles_post_ra>
// kernel: tpu_custom_call.1
= control target key start
LH: loop header
LB: loop body
LE: loop exit
PB: predicated region body
PF: predicated region fallthrough
CT: control target
= control target key end

     0   :  { %14 = vsyncpa [#allocation3], 0  ;;  %s554_s0 = inlined_call_operand.hbm [shape: f32[8,16], index: 0, kind: input, shape index: {}]   ;;  %s555_s1 = inlined_call_operand.hbm [shape: bf16[16,128], index: 1, kind: input, shape index: {}]   ;;  %s556_s2 = inlined_call_operand.vmem [shape: f32[1,128], index: 2, kind: input, shape index: {}]   ;;  %s557_s3 = inlined_call_operand.vmem [shape: bf16[128,128], index: 3, kind: input, shape index: {}]   ;;  %s558_s4 = inlined_call_operand.vmem [shape: f32[1,128], index: 4, kind: input, shape index: {}]   ;;  %s559_s5 = inlined_call_operand.vmem [shape: bf16[128,4], index: 5, kind: input, shape index: {}]   ;;  %s560_s6 = inlined_call_operand.vmem [shape: f32[1,4], index: 6, kind: input, shape index: {}]   ;;  %s561_s7 = inlined_call_operand.vmem [shape: f32[1,4], index: 7, kind: input, shape index: {}]   ;;  %s562_s8 = inlined_call_operand.vmem [shape: f32[1,4], index: 8, kind: input, shape index: {}]   ;;  %s563_s9 = inlined_call_operand.vmem [shape: f32[8,4], index: 9, kind: output, shape index: {}]  }
   0x1   :  { %s21_s11 = sshll.u32 %s554_s0, 4  ;;  %s22_s11 = int_to_ptr.hbm [resolvable:$true] %s21_s11 }
   0x2   :  { %15 = vsyncpa [#allocation5], 0  ;;  %s428_s12 = smov [#allocation2]   ;;  %s31_s16 = sshll.u32 %s555_s1, 4  ;;  %s32_s16 = int_to_ptr.hbm [resolvable:$true] %s31_s16 }
   0x3   :  { %s23_s13 = sshll.u32 %s428_s12, 4  ;;  %s429_s17 = smov [#allocation4]   ;;  %s24_s13 = int_to_ptr.vmem [resolvable:$true] %s23_s13 }
   0x4   :  { %26 = dma.hbm_to_vmem [thread:$0]  %s22_s11, 128, %s24_s13, [#allocation3]  }
   0x5   :  { %s33_s18 = sshll.u32 %s429_s17, 4  ;;  %s430_s19 = smov 64   ;;  %s34_s18 = int_to_ptr.vmem [resolvable:$true] %s33_s18 }
   0x6   :  { %s431_s20 = smov 4  }
   0x7   :  { %39 = dma.hbm_to_vmem [thread:$0]  %s32_s16, 128, %s34_s18, [#allocation5], %s430_s19, %s430_s19, %s431_s20  }
   0x8   :  { %424 = dma.done.wait [#allocation3], 128  }
   0x9   :  { %425 = vsyncadd [#allocation3], 4294967168 }
   0xa   :  { %426 = dma.done.wait [#allocation5], 128  }
   0xb   :  { %427 = vsyncadd [#allocation5], 4294967168  ;;  %v348_v0 = vld [vmem:[#allocation4] sm:$0xff]  ;;  %v63_v1 = vld [vmem:[#allocation2] sm:$0xff]  ;;  %vm77_vm0 = vcmask 130048   ;;  %vm271_vm1 = vcmask 31744  }
   0xc   :  { %v356_v2 = vld [vmem:[%s557_s3 + $0x38] sm:$0xff]  ;;  %v64_v3 = vpack.c.bf16 %v63_v1, %v63_v1  ;;  %88 = vmatpush.bf16.msra.mxu0 %v348_v0  ;;  %v355_v4 = vld [vmem:[%s557_s3 + $0x30] sm:$0xff]  ;;  %v354_v5 = vld [vmem:[%s557_s3 + $0x28] sm:$0xff] }
   0xd   :  { %164 = vmatpush.bf16.msra.mxu1 %v356_v2  ;;  %v353_v6 = vld [vmem:[%s557_s3 + $0x20] sm:$0xff]  ;;  %v352_v7 = vld [vmem:[%s557_s3 + $0x18] sm:$0xff]  ;;  %v351_v8 = vld [vmem:[%s557_s3 + $0x10] sm:$0xff] }
   0xe   :  { %v350_v9 = vld [vmem:[%s557_s3 + $0x8] sm:$0xff]  ;;  %v349_v10 = vld [vmem:[%s557_s3] sm:$0xff]  ;;  %v364_v11 = vld [vmem:[%s559_s5 + $0x38] sm:$0xff] }
   0xf   :  { %283 = vmatmul.msk.bf16.vlgmr.msra.gmra.mxu0 %vm77_vm0, %v64_v3  ;;  %247 = vmatpush.bf16.msra.mxu2 %v364_v11  ;;  %v363_v12 = vld [vmem:[%s559_s5 + $0x30] sm:$0xff]  ;;  %v362_v13 = vld [vmem:[%s559_s5 + $0x28] sm:$0xff]  ;;  %v361_v14 = vld [vmem:[%s559_s5 + $0x20] sm:$0xff] }
  0x10   :  { %v360_v15 = vld [vmem:[%s559_s5 + $0x18] sm:$0xff]  ;;  %v359_v16 = vld [vmem:[%s559_s5 + $0x10] sm:$0xff]  ;;  %v369_v17 = vld [vmem:[%s556_s2] ss:$0 sm:$0xff] }
  0x11   :  { %165 = vmatpush.bf16.msra.mxu1 %v355_v4  ;;  %v358_v23 = vld [vmem:[%s559_s5 + $0x8] sm:$0xff]  ;;  %v357_v24 = vld [vmem:[%s559_s5] sm:$0xff] }
  0x12   :  { %v370_v25 = vld [vmem:[%s558_s4] ss:$0 sm:$0xff] }
  0x13   :  { %248 = vmatpush.bf16.msra.mxu2 %v363_v12  ;;  %v371_v31 = vld [vmem:[%s560_s6] ss:$0 sm:$0xff] }
  0x14   :  { %v372_v34 = vld [vmem:[%s561_s7] ss:$0 sm:$0xff] }
  0x15   :  { %166 = vmatpush.bf16.msra.mxu1 %v354_v5  ;;  %v373_v35 = vld [vmem:[%s562_s8] ss:$0 sm:$0xff] }
  0x17   :  { %249 = vmatpush.bf16.msra.mxu2 %v362_v13 }
  0x19   :  { %167 = vmatpush.bf16.msra.mxu1 %v353_v6 }
  0x1b   :  { %250 = vmatpush.bf16.msra.mxu2 %v361_v14 }
  0x1d   :  { %168 = vmatpush.bf16.msra.mxu1 %v352_v7 }
  0x1f   :  { %251 = vmatpush.bf16.msra.mxu2 %v360_v15 }
  0x21   :  { %169 = vmatpush.bf16.msra.mxu1 %v351_v8 }
  0x23   :  { %252 = vmatpush.bf16.msra.mxu2 %v359_v16 }
  0x25   :  { %170 = vmatpush.bf16.msra.mxu1 %v350_v9 }
  0x27   :  { %253 = vmatpush.bf16.msra.mxu2 %v358_v23 }
  0x29   :  { %171 = vmatpush.bf16.msra.mxu1 %v349_v10 }
  0x2b   :  { %254 = vmatpush.bf16.msra.mxu2 %v357_v24 }
  0x8c   :  { %v90_v18 = vpop.f32.mrf.mxu0 }
  0x8d   :  { %v91_v19 = vadd.f32 %v369_v17, %v90_v18 }
  0x8f   :  { %v94_v20 = vmax.f32 %v91_v19, 0.0 }
  0x91   :  { %v95_v21 = vpack.c.bf16 %v94_v20, %v94_v20 }
  0x93   :  { %172 = vmatmul.bf16.vlgmr.msra.gmra.mxu1 %v95_v21 }
  0x94   :  { %v92_v22 = vpop.f32.mrf.mxu0 }
 0x110   :  { %v173_v26 = vpop.f32.mrf.mxu1 }
 0x111   :  { %v174_v27 = vadd.f32 %v370_v25, %v173_v26 }
 0x113   :  { %v177_v28 = vmax.f32 %v174_v27, 0.0 }
 0x115   :  { %v178_v29 = vpack.c.bf16 %v177_v28, %v177_v28 }
 0x117   :  { %255 = vmatmul.bf16.vlgmr.msra.gmra.mxu2 %v178_v29 }
 0x118   :  { %v175_v30 = vpop.f32.mrf.mxu1 }
 0x19a   :  { %v256_v32 = vpop.f32.mrf.mxu2 }
 0x19b   :  { %v257_v33 = vadd.f32 %v371_v31, %v256_v32 }
 0x19d   :  { %374 = vtanh.f32 %v257_v33 }
 0x1a2   :  { %v258_v36 = vpop.f32.mrf.mxu2 }
 0x1a3   :  { %v375_v37 = vpop.eup %374 }
 0x1a4   :  { %v265_v38 = vmul.f32 %v375_v37, %v372_v34 }
 0x1a6   :  { %v270_v39 = vadd.f32 %v373_v35, %v265_v38 }
 0x1a8   :  { %272 = vst.msk [vmem:[%s563_s9] sm:$0xff] %vm271_vm1, %v270_v39 }
 0x1a9   :  { %277 = vsyncpa [#allocation3], 1 }
 0x1aa   :  { %278 = vsyncpa [#allocation5], 1 }

</bundles_post_ra>
